<compile_context>
chip_gen: v6e
topology: v6e:2x2x1
jax: 0.10.0
libtpu: 0.0.40
codegen_flags: <defaults>
</compile_context>

<pallas_src>
import jax
import jax.numpy as jnp
from jax.experimental import pallas as pl
from jax.experimental.pallas import tpu as pltpu


_LANE = 128
_TARGET_TILE = 512              # per-axis tile target (f32 sweet spot, lane aligned)
_TARGET_BLOCK_BYTES = 2 << 20   # ~2 MiB per pipeline buffer
_MIN_PALLAS_ELEMENTS = 4096     # below this the pallas_call fixed cost dominates


def _transpose_kernel(x_ref, o_ref):
    # x_ref: (Bb, Ct, Tt) block, o_ref: (Bb, Tt, Ct) block.
    # The per-tile permute is XLU (vxpose) work; the block-index swap in the
    # output index_map does the coarse-grained transpose via DMA placement.
    o_ref[...] = jnp.transpose(x_ref[...], (0, 2, 1))


def _tile_size(dim, target=_TARGET_TILE, align=_LANE):
    """Full dim if small (BlockSpec 'full array dim' exception), else a
    128-aligned tile <= target (keeps both input lane dim and output lane dim
    lane-dense -> unmasked vst, and satisfies the (8,128) rule for all dtypes)."""
    if dim <= target:
        return dim
    return max(align, (target // align) * align)


def pallas_transpose_12(x):
    """Pallas equivalent of torch `x.transpose(1, 2)` on a rank-3 (B, C, T) array."""
    assert x.ndim == 3, "this kernel implements dims=(1, 2) on a rank-3 input"
    B, C, T = x.shape
    itemsize = jnp.dtype(x.dtype).itemsize

    Ct = _tile_size(C)
    Tt = _tile_size(T)

    # Fold batches per block when the (Ct, Tt) slab is small.
    slab_bytes = max(1, Ct * Tt * itemsize)
    Bb = int(max(1, min(B, _TARGET_BLOCK_BYTES // slab_bytes)))

    grid = (pl.cdiv(B, Bb), pl.cdiv(C, Ct), pl.cdiv(T, Tt))

    return pl.pallas_call(
        _transpose_kernel,
        out_shape=jax.ShapeDtypeStruct((B, T, C), x.dtype),
        grid=grid,
        in_specs=[pl.BlockSpec((Bb, Ct, Tt), lambda b, i, j: (b, i, j))],
        # Block-index swap: output tile (j, i) receives the transpose of input
        # tile (i, j). Ragged edge blocks are padded on read / masked on write
        # by the pipeline, so non-multiple C/T stays correct.
        out_specs=pl.BlockSpec((Bb, Tt, Ct), lambda b, i, j: (b, j, i)),
        compiler_params=pltpu.CompilerParams(
            dimension_semantics=("parallel", "parallel", "parallel"),
            vmem_limit_bytes=32 * 1024 * 1024,
        ),
    )(x)


class Transpose:
    """JAX/Pallas port of lynxnet.Transpose (no parameters)."""

    def __init__(self, dims):
        assert len(dims) == 2, "dims must be a tuple of two dimensions"
        self.dims = dims

    def __call__(self, x):
        d0, d1 = self.dims
        d0 = d0 % x.ndim
        d1 = d1 % x.ndim
        if (x.ndim == 3 and {d0, d1} == {1, 2}
                and x.size >= _MIN_PALLAS_ELEMENTS):
            # Hot path (NCL <-> NLC around conv1d) as a Pallas kernel.
            return pallas_transpose_12(x)
        # Tiny inputs / arbitrary-axis swaps: pure layout permutation, let XLA
        # handle it (for tiny arrays pallas_call fixed cost exceeds copy time).
        # TODO(synk): when this op sits next to a conv/matmul, fold the axis
        # swap into the downstream dot_general/conv dimension_numbers instead
        # of materializing the transposed array at all.
        perm = list(range(x.ndim))
        perm[d0], perm[d1] = perm[d1], perm[d0]
        return jnp.transpose(x, perm)


if __name__ == "__main__":
    key = jax.random.PRNGKey(0)
    k1, k2, k3, k4, k5 = jax.random.split(key, 5)
    mod = Transpose((1, 2))

    # 1) Hot path through the Pallas kernel (NCL -> NLC, full-dim blocks).
    x1 = jax.random.normal(k1, (2, 64, 256), dtype=jnp.float32)
    y1 = jax.block_until_ready(mod(x1))
    assert y1.shape == (2, 256, 64)
    assert jnp.array_equal(y1, jnp.transpose(x1, (0, 2, 1)))

    # 2) Direct kernel call at a tiny shape (exercises full-dim exception).
    x2 = jax.random.normal(k2, (2, 4, 16), dtype=jnp.float32)
    y2 = jax.block_until_ready(pallas_transpose_12(x2))
    assert jnp.array_equal(y2, jnp.transpose(x2, (0, 2, 1)))

    # 3) bf16 activations (what lynxnet actually feeds through this op).
    x3 = jax.random.normal(k3, (2, 48, 160), dtype=jnp.float32).astype(jnp.bfloat16)
    y3 = jax.block_until_ready(mod(x3))
    assert jnp.array_equal(y3, jnp.transpose(x3, (0, 2, 1)))

    # 4) Ragged tiles: C and T both exceed one 512 tile and are non-multiples,
    #    exercising the swapped index_map on padded/masked edge blocks.
    x4 = jax.random.normal(k4, (1, 600, 640), dtype=jnp.float32)
    y4 = jax.block_until_ready(pallas_transpose_12(x4))
    assert jnp.array_equal(y4, jnp.transpose(x4, (0, 2, 1)))

    # 5) Tiny-input bypass path (no kernel launch).
    x5 = jax.random.normal(k5, (2, 4, 8), dtype=jnp.float32)
    y5 = jax.block_until_ready(mod(x5))
    assert jnp.array_equal(y5, jnp.transpose(x5, (0, 2, 1)))

    print("KERNEL_OK")
</pallas_src>

<mosaic_0001>
module attributes {stable_mosaic.version = 11 : i64} {
  func.func @_transpose_kernel(%arg0: i32, %arg1: i32, %arg2: i32, %arg3: memref<2x64x256xf32, #tpu.memory_space<vmem>>, %arg4: memref<2x256x64xf32, #tpu.memory_space<vmem>>) attributes {dimension_semantics = [#tpu.dimension_semantics<parallel>, #tpu.dimension_semantics<parallel>, #tpu.dimension_semantics<parallel>], iteration_bounds = array<i64: 1, 1, 1>, scalar_prefetch = 0 : i64, scratch_operands = 0 : i64, tpu.core_type = #tpu.core_type<tc>, window_params = [{transform_indices = @transform_0, window_bounds = array<i64: 2, 64, 256>}, {transform_indices = @transform_1, window_bounds = array<i64: 2, 256, 64>}]} {
    %c0 = arith.constant 0 : index
    %c0_0 = arith.constant 0 : index
    %c0_1 = arith.constant 0 : index
    %0 = vector.load %arg3[%c0, %c0_0, %c0_1] : memref<2x64x256xf32, #tpu.memory_space<vmem>>, vector<2x64x256xf32>
    %1 = tpu.transpose %0, [0, 2, 1] : vector<2x64x256xf32> -> vector<2x256x64xf32>
    %c0_2 = arith.constant 0 : index
    %c0_3 = arith.constant 0 : index
    %c0_4 = arith.constant 0 : index
    %2 = vector.load %arg4[%c0_2, %c0_3, %c0_4] : memref<2x256x64xf32, #tpu.memory_space<vmem>>, vector<2x256x64xf32>
    tpu.vector_store %arg4[%c0_2, %c0_3, %c0_4], %1 {strides = array<i32>} : memref<2x256x64xf32, #tpu.memory_space<vmem>>, vector<2x256x64xf32>,
    return
  }
  func.func @transform_0(%arg0: i32, %arg1: i32, %arg2: i32) -> (i32, i32, i32) {
    %c0_i32 = arith.constant 0 : i32
    return %arg0, %arg1, %arg2 : i32, i32, i32
  }
  func.func @transform_1(%arg0: i32, %arg1: i32, %arg2: i32) -> (i32, i32, i32) {
    %c0_i32 = arith.constant 0 : i32
    return %arg0, %arg2, %arg1 : i32, i32, i32
  }
}

</mosaic_0001>

<bundles_post_ra>
// kernel: tpu_custom_call.1
= control target key start
LH: loop header
LB: loop body
LE: loop exit
PB: predicated region body
PF: predicated region fallthrough
CT: control target
= control target key end

     0   :  { %6 = vsyncpa [#allocation3], 0  ;;  %s278_s6 = smov [#allocation2]   ;;  %s550_s0 = inlined_call_operand.hbm [shape: f32[2,64,256], index: 0, kind: input, shape index: {}]   ;;  %s551_s1 = inlined_call_operand.vmem [shape: f32[2,256,64], index: 1, kind: output, shape index: {}]  }
   0x1   :  { %s12_s7 = sshll.u32 %s278_s6, 4  ;;  %s13_s7 = int_to_ptr.vmem [resolvable:$true] %s12_s7 }
   0x2   :  { %s264_s8 = scalar_lea.vmem %s13_s7, 4096  ;;  %p269_p1 = scmp.lt.s32.totalorder %s13_s7, %s13_s7 }
   0x3   :  { %p265_p0 = scmp.ne.s32.totalorder %s13_s7, %s264_s8  ;;  %p270_p2 = scmp.lt.s32.totalorder %s264_s8, %s264_s8 }
   0x5   :  { %p271_p3 = por %p270_p2, %p269_p1 }
   0x7   :  { %p272_p4 = pnand %p271_p3, %p265_p0 }
   0x9   :  { %275 = shalt.err (!%p272_p4)
}
   0xa   :  { %s279_s9 = smov 256   ;;  %s280_s10 = smov 16  }
   0xb   :  { %18 = dma.hbm_to_vmem [thread:$0]  %s550_s0, 4096, %s13_s7, [#allocation3], %s279_s9, %s279_s9, %s280_s10  }
   0xc   :  { %276 = dma.done.wait [#allocation3], 4096  }
   0xd   :  { %277 = vsyncadd [#allocation3], 4294963200  ;;  %v23_v0 = vld [vmem:[#allocation2 + $0x8] sm:$0xff]  ;;  %v22_v1 = vld [vmem:[#allocation2] sm:$0xff]  ;;  %vm182_vm0 = vcmask 523264  }
   0xe   :  { %86 = vxpose.xlu1.b32.start [1/8] (short) %v23_v0, 128  ;;  %54 = vxpose.xlu0.b32.start [1/8] (short) %v22_v1, 128  ;;  %v25_v2 = vld [vmem:[#allocation2 + $0x18] sm:$0xff]  ;;  %v24_v3 = vld [vmem:[#allocation2 + $0x10] sm:$0xff]  ;;  %v27_v4 = vld [vmem:[#allocation2 + $0x28] sm:$0xff] }
   0xf   :  { %v26_v5 = vld [vmem:[#allocation2 + $0x20] sm:$0xff]  ;;  %v29_v6 = vld [vmem:[#allocation2 + $0x38] sm:$0xff]  ;;  %v28_v7 = vld [vmem:[#allocation2 + $0x30] sm:$0xff] }
  0x10   :  { %v31_v8 = vld [vmem:[#allocation2 + $0x48] sm:$0xff]  ;;  %v30_v9 = vld [vmem:[#allocation2 + $0x40] sm:$0xff]  ;;  %v33_v10 = vld [vmem:[#allocation2 + $0x58] sm:$0xff] }
  0x11   :  { %v32_v11 = vld [vmem:[#allocation2 + $0x50] sm:$0xff]  ;;  %v35_v12 = vld [vmem:[#allocation2 + $0x68] sm:$0xff]  ;;  %v34_v13 = vld [vmem:[#allocation2 + $0x60] sm:$0xff] }
  0x12   :  { %87 = vxpose.xlu1.b32.cont [2/8] (short) %v25_v2, 128  ;;  %55 = vxpose.xlu0.b32.cont [2/8] (short) %v24_v3, 128  ;;  %v37_v14 = vld [vmem:[#allocation2 + $0x78] sm:$0xff]  ;;  %v36_v15 = vld [vmem:[#allocation2 + $0x70] sm:$0xff]  ;;  %v39_v16 = vld [vmem:[#allocation2 + $0x88] sm:$0xff] }
  0x13   :  { %v38_v17 = vld [vmem:[#allocation2 + $0x80] sm:$0xff]  ;;  %v41_v18 = vld [vmem:[#allocation2 + $0x98] sm:$0xff]  ;;  %v40_v19 = vld [vmem:[#allocation2 + $0x90] sm:$0xff] }
  0x14   :  { %v43_v20 = vld [vmem:[#allocation2 + $0xa8] sm:$0xff]  ;;  %v42_v21 = vld [vmem:[#allocation2 + $0xa0] sm:$0xff]  ;;  %v45_v22 = vld [vmem:[#allocation2 + $0xb8] sm:$0xff] }
  0x15   :  { %v44_v23 = vld [vmem:[#allocation2 + $0xb0] sm:$0xff]  ;;  %v47_v24 = vld [vmem:[#allocation2 + $0xc8] sm:$0xff]  ;;  %v46_v25 = vld [vmem:[#allocation2 + $0xc0] sm:$0xff] }
  0x16   :  { %88 = vxpose.xlu1.b32.cont [3/8] (short) %v27_v4, 128  ;;  %56 = vxpose.xlu0.b32.cont [3/8] (short) %v26_v5, 128  ;;  %v49_v26 = vld [vmem:[#allocation2 + $0xd8] sm:$0xff]  ;;  %v48_v27 = vld [vmem:[#allocation2 + $0xd0] sm:$0xff]  ;;  %v51_v28 = vld [vmem:[#allocation2 + $0xe8] sm:$0xff] }
  0x17   :  { %v50_v29 = vld [vmem:[#allocation2 + $0xe0] sm:$0xff]  ;;  %v53_v30 = vld [vmem:[#allocation2 + $0xf8] sm:$0xff]  ;;  %v52_v31 = vld [vmem:[#allocation2 + $0xf0] sm:$0xff] }
  0x1a   :  { %89 = vxpose.xlu1.b32.cont [4/8] (short) %v29_v6, 128  ;;  %57 = vxpose.xlu0.b32.cont [4/8] (short) %v28_v7, 128 }
  0x1e   :  { %90 = vxpose.xlu1.b32.cont [5/8] (short) %v31_v8, 128  ;;  %58 = vxpose.xlu0.b32.cont [5/8] (short) %v30_v9, 128 }
  0x22   :  { %91 = vxpose.xlu1.b32.cont [6/8] (short) %v33_v10, 128  ;;  %59 = vxpose.xlu0.b32.cont [6/8] (short) %v32_v11, 128 }
  0x26   :  { %92 = vxpose.xlu1.b32.cont [7/8] (short) %v35_v12, 128  ;;  %60 = vxpose.xlu0.b32.cont [7/8] (short) %v34_v13, 128 }
  0x2a   :  { %93 = vxpose.xlu1.b32.end [8/8] (short) %v37_v14, 128  ;;  %61 = vxpose.xlu0.b32.end [8/8] (short) %v36_v15, 128 }
  0x4b   :  { %150 = vxpose.xlu1.b32.start [1/8] (short) %v39_v16, 128  ;;  %118 = vxpose.xlu0.b32.start [1/8] (short) %v38_v17, 128 }
  0x4f   :  { %151 = vxpose.xlu1.b32.cont [2/8] (short) %v41_v18, 128  ;;  %119 = vxpose.xlu0.b32.cont [2/8] (short) %v40_v19, 128 }
  0x53   :  { %152 = vxpose.xlu1.b32.cont [3/8] (short) %v43_v20, 128  ;;  %120 = vxpose.xlu0.b32.cont [3/8] (short) %v42_v21, 128 }
  0x57   :  { %153 = vxpose.xlu1.b32.cont [4/8] (short) %v45_v22, 128  ;;  %121 = vxpose.xlu0.b32.cont [4/8] (short) %v44_v23, 128 }
  0x5b   :  { %154 = vxpose.xlu1.b32.cont [5/8] (short) %v47_v24, 128  ;;  %122 = vxpose.xlu0.b32.cont [5/8] (short) %v46_v25, 128 }
  0x5f   :  { %155 = vxpose.xlu1.b32.cont [6/8] (short) %v49_v26, 128  ;;  %123 = vxpose.xlu0.b32.cont [6/8] (short) %v48_v27, 128 }
  0x63   :  { %156 = vxpose.xlu1.b32.cont [7/8] (short) %v51_v28, 128  ;;  %124 = vxpose.xlu0.b32.cont [7/8] (short) %v50_v29, 128 }
  0x67   :  { %157 = vxpose.xlu1.b32.end [8/8] (short) %v53_v30, 128  ;;  %125 = vxpose.xlu0.b32.end [8/8] (short) %v52_v31, 128 }
  0x8a   :  { %v102_v32 = vpop.trf.xlu1  ;;  %v70_v33 = vpop.trf.xlu0 }
  0x8b   :  { %199 = vst.msk [vmem:[%s551_s1 + $0x80] sm:$0xff] %vm182_vm0, %v102_v32  ;;  %183 = vst.msk [vmem:[%s551_s1] sm:$0xff] %vm182_vm0, %v70_v33 }
  0x8e   :  { %v103_v34 = vpop.trf.xlu1  ;;  %v71_v35 = vpop.trf.xlu0 }
  0x8f   :  { %200 = vst.msk [vmem:[%s551_s1 + $0x88] sm:$0xff] %vm182_vm0, %v103_v34  ;;  %184 = vst.msk [vmem:[%s551_s1 + $0x8] sm:$0xff] %vm182_vm0, %v71_v35 }
  0x92   :  { %v104_v36 = vpop.trf.xlu1  ;;  %v72_v37 = vpop.trf.xlu0 }
  0x93   :  { %201 = vst.msk [vmem:[%s551_s1 + $0x90] sm:$0xff] %vm182_vm0, %v104_v36  ;;  %185 = vst.msk [vmem:[%s551_s1 + $0x10] sm:$0xff] %vm182_vm0, %v72_v37 }
  0x96   :  { %v105_v38 = vpop.trf.xlu1  ;;  %v73_v39 = vpop.trf.xlu0 }
  0x97   :  { %202 = vst.msk [vmem:[%s551_s1 + $0x98] sm:$0xff] %vm182_vm0, %v105_v38  ;;  %186 = vst.msk [vmem:[%s551_s1 + $0x18] sm:$0xff] %vm182_vm0, %v73_v39 }
  0x9a   :  { %v106_v40 = vpop.trf.xlu1  ;;  %v74_v41 = vpop.trf.xlu0 }
  0x9b   :  { %203 = vst.msk [vmem:[%s551_s1 + $0xa0] sm:$0xff] %vm182_vm0, %v106_v40  ;;  %187 = vst.msk [vmem:[%s551_s1 + $0x20] sm:$0xff] %vm182_vm0, %v74_v41 }
  0x9e   :  { %v107_v42 = vpop.trf.xlu1  ;;  %v75_v43 = vpop.trf.xlu0 }
  0x9f   :  { %204 = vst.msk [vmem:[%s551_s1 + $0xa8] sm:$0xff] %vm182_vm0, %v107_v42  ;;  %188 = vst.msk [vmem:[%s551_s1 + $0x28] sm:$0xff] %vm182_vm0, %v75_v43 }
  0xa2   :  { %v108_v44 = vpop.trf.xlu1  ;;  %v76_v45 = vpop.trf.xlu0 }
  0xa3   :  { %205 = vst.msk [vmem:[%s551_s1 + $0xb0] sm:$0xff] %vm182_vm0, %v108_v44  ;;  %189 = vst.msk [vmem:[%s551_s1 + $0x30] sm:$0xff] %vm182_vm0, %v76_v45 }
  0xa6   :  { %v109_v46 = vpop.trf.xlu1  ;;  %v77_v47 = vpop.trf.xlu0 }
  0xa7   :  { %206 = vst.msk [vmem:[%s551_s1 + $0xb8] sm:$0xff] %vm182_vm0, %v109_v46  ;;  %190 = vst.msk [vmem:[%s551_s1 + $0x38] sm:$0xff] %vm182_vm0, %v77_v47 }
  0xaa   :  { %v110_v48 = vpop.trf.xlu1  ;;  %v78_v49 = vpop.trf.xlu0 }
  0xab   :  { %207 = vst.msk [vmem:[%s551_s1 + $0xc0] sm:$0xff] %vm182_vm0, %v110_v48  ;;  %191 = vst.msk [vmem:[%s551_s1 + $0x40] sm:$0xff] %vm182_vm0, %v78_v49 }
  0xae   :  { %v111_v50 = vpop.trf.xlu1  ;;  %v79_v51 = vpop.trf.xlu0 }
  0xaf   :  { %208 = vst.msk [vmem:[%s551_s1 + $0xc8] sm:$0xff] %vm182_vm0, %v111_v50  ;;  %192 = vst.msk [vmem:[%s551_s1 + $0x48] sm:$0xff] %vm182_vm0, %v79_v51 }
  0xb2   :  { %v112_v52 = vpop.trf.xlu1  ;;  %v80_v53 = vpop.trf.xlu0 }
  0xb3   :  { %209 = vst.msk [vmem:[%s551_s1 + $0xd0] sm:$0xff] %vm182_vm0, %v112_v52  ;;  %193 = vst.msk [vmem:[%s551_s1 + $0x50] sm:$0xff] %vm182_vm0, %v80_v53 }
  0xb6   :  { %v113_v54 = vpop.trf.xlu1  ;;  %v81_v55 = vpop.trf.xlu0 }
  0xb7   :  { %210 = vst.msk [vmem:[%s551_s1 + $0xd8] sm:$0xff] %vm182_vm0, %v113_v54  ;;  %194 = vst.msk [vmem:[%s551_s1 + $0x58] sm:$0xff] %vm182_vm0, %v81_v55 }
  0xba   :  { %v114_v56 = vpop.trf.xlu1  ;;  %v82_v57 = vpop.trf.xlu0 }
  0xbb   :  { %211 = vst.msk [vmem:[%s551_s1 + $0xe0] sm:$0xff] %vm182_vm0, %v114_v56  ;;  %195 = vst.msk [vmem:[%s551_s1 + $0x60] sm:$0xff] %vm182_vm0, %v82_v57 }
  0xbe   :  { %v115_v58 = vpop.trf.xlu1  ;;  %v83_v59 = vpop.trf.xlu0 }
  0xbf   :  { %212 = vst.msk [vmem:[%s551_s1 + $0xe8] sm:$0xff] %vm182_vm0, %v115_v58  ;;  %196 = vst.msk [vmem:[%s551_s1 + $0x68] sm:$0xff] %vm182_vm0, %v83_v59 }
  0xc2   :  { %v116_v60 = vpop.trf.xlu1  ;;  %v84_v61 = vpop.trf.xlu0 }
  0xc3   :  { %213 = vst.msk [vmem:[%s551_s1 + $0xf0] sm:$0xff] %vm182_vm0, %v116_v60  ;;  %197 = vst.msk [vmem:[%s551_s1 + $0x70] sm:$0xff] %vm182_vm0, %v84_v61 }
  0xc6   :  { %v117_v62 = vpop.trf.xlu1  ;;  %v85_v63 = vpop.trf.xlu0 }
  0xc7   :  { %214 = vst.msk [vmem:[%s551_s1 + $0xf8] sm:$0xff] %vm182_vm0, %v117_v62  ;;  %198 = vst.msk [vmem:[%s551_s1 + $0x78] sm:$0xff] %vm182_vm0, %v85_v63 }
  0xca   :  { %v166_v0 = vpop.trf.xlu1  ;;  %v134_v1 = vpop.trf.xlu0 }
  0xcb   :  { %231 = vst.msk [vmem:[%s551_s1 + $0x180] sm:$0xff] %vm182_vm0, %v166_v0  ;;  %215 = vst.msk [vmem:[%s551_s1 + $0x100] sm:$0xff] %vm182_vm0, %v134_v1 }
  0xce   :  { %v167_v2 = vpop.trf.xlu1  ;;  %v135_v3 = vpop.trf.xlu0 }
  0xcf   :  { %232 = vst.msk [vmem:[%s551_s1 + $0x188] sm:$0xff] %vm182_vm0, %v167_v2  ;;  %216 = vst.msk [vmem:[%s551_s1 + $0x108] sm:$0xff] %vm182_vm0, %v135_v3 }
  0xd2   :  { %v168_v4 = vpop.trf.xlu1  ;;  %v136_v5 = vpop.trf.xlu0 }
  0xd3   :  { %233 = vst.msk [vmem:[%s551_s1 + $0x190] sm:$0xff] %vm182_vm0, %v168_v4  ;;  %217 = vst.msk [vmem:[%s551_s1 + $0x110] sm:$0xff] %vm182_vm0, %v136_v5 }
  0xd6   :  { %v169_v6 = vpop.trf.xlu1  ;;  %v137_v7 = vpop.trf.xlu0 }
  0xd7   :  { %234 = vst.msk [vmem:[%s551_s1 + $0x198] sm:$0xff] %vm182_vm0, %v169_v6  ;;  %218 = vst.msk [vmem:[%s551_s1 + $0x118] sm:$0xff] %vm182_vm0, %v137_v7 }
  0xda   :  { %v170_v8 = vpop.trf.xlu1  ;;  %v138_v9 = vpop.trf.xlu0 }
  0xdb   :  { %235 = vst.msk [vmem:[%s551_s1 + $0x1a0] sm:$0xff] %vm182_vm0, %v170_v8  ;;  %219 = vst.msk [vmem:[%s551_s1 + $0x120] sm:$0xff] %vm182_vm0, %v138_v9 }
  0xde   :  { %v171_v10 = vpop.trf.xlu1  ;;  %v139_v11 = vpop.trf.xlu0 }
  0xdf   :  { %236 = vst.msk [vmem:[%s551_s1 + $0x1a8] sm:$0xff] %vm182_vm0, %v171_v10  ;;  %220 = vst.msk [vmem:[%s551_s1 + $0x128] sm:$0xff] %vm182_vm0, %v139_v11 }
  0xe2   :  { %v172_v12 = vpop.trf.xlu1  ;;  %v140_v13 = vpop.trf.xlu0 }
  0xe3   :  { %237 = vst.msk [vmem:[%s551_s1 + $0x1b0] sm:$0xff] %vm182_vm0, %v172_v12  ;;  %221 = vst.msk [vmem:[%s551_s1 + $0x130] sm:$0xff] %vm182_vm0, %v140_v13 }
  0xe6   :  { %v173_v14 = vpop.trf.xlu1  ;;  %v141_v15 = vpop.trf.xlu0 }
  0xe7   :  { %238 = vst.msk [vmem:[%s551_s1 + $0x1b8] sm:$0xff] %vm182_vm0, %v173_v14  ;;  %222 = vst.msk [vmem:[%s551_s1 + $0x138] sm:$0xff] %vm182_vm0, %v141_v15 }
  0xea   :  { %v174_v16 = vpop.trf.xlu1  ;;  %v142_v17 = vpop.trf.xlu0 }
  0xeb   :  { %239 = vst.msk [vmem:[%s551_s1 + $0x1c0] sm:$0xff] %vm182_vm0, %v174_v16  ;;  %223 = vst.msk [vmem:[%s551_s1 + $0x140] sm:$0xff] %vm182_vm0, %v142_v17 }
  0xee   :  { %v175_v18 = vpop.trf.xlu1  ;;  %v143_v19 = vpop.trf.xlu0 }
  0xef   :  { %240 = vst.msk [vmem:[%s551_s1 + $0x1c8] sm:$0xff] %vm182_vm0, %v175_v18  ;;  %224 = vst.msk [vmem:[%s551_s1 + $0x148] sm:$0xff] %vm182_vm0, %v143_v19 }
  0xf2   :  { %v176_v20 = vpop.trf.xlu1  ;;  %v144_v21 = vpop.trf.xlu0 }
  0xf3   :  { %241 = vst.msk [vmem:[%s551_s1 + $0x1d0] sm:$0xff] %vm182_vm0, %v176_v20  ;;  %225 = vst.msk [vmem:[%s551_s1 + $0x150] sm:$0xff] %vm182_vm0, %v144_v21 }
  0xf6   :  { %v177_v22 = vpop.trf.xlu1  ;;  %v145_v23 = vpop.trf.xlu0 }
  0xf7   :  { %242 = vst.msk [vmem:[%s551_s1 + $0x1d8] sm:$0xff] %vm182_vm0, %v177_v22  ;;  %226 = vst.msk [vmem:[%s551_s1 + $0x158] sm:$0xff] %vm182_vm0, %v145_v23 }
  0xfa   :  { %v178_v24 = vpop.trf.xlu1  ;;  %v146_v25 = vpop.trf.xlu0 }
  0xfb   :  { %243 = vst.msk [vmem:[%s551_s1 + $0x1e0] sm:$0xff] %vm182_vm0, %v178_v24  ;;  %227 = vst.msk [vmem:[%s551_s1 + $0x160] sm:$0xff] %vm182_vm0, %v146_v25 }
  0xfe   :  { %v179_v26 = vpop.trf.xlu1  ;;  %v147_v27 = vpop.trf.xlu0 }
  0xff   :  { %244 = vst.msk [vmem:[%s551_s1 + $0x1e8] sm:$0xff] %vm182_vm0, %v179_v26  ;;  %228 = vst.msk [vmem:[%s551_s1 + $0x168] sm:$0xff] %vm182_vm0, %v147_v27 }
 0x102   :  { %v180_v28 = vpop.trf.xlu1  ;;  %v148_v29 = vpop.trf.xlu0 }
 0x103   :  { %245 = vst.msk [vmem:[%s551_s1 + $0x1f0] sm:$0xff] %vm182_vm0, %v180_v28  ;;  %229 = vst.msk [vmem:[%s551_s1 + $0x170] sm:$0xff] %vm182_vm0, %v148_v29 }
 0x106   :  { %v181_v30 = vpop.trf.xlu1  ;;  %v149_v31 = vpop.trf.xlu0 }
 0x107   :  { %246 = vst.msk [vmem:[%s551_s1 + $0x1f8] sm:$0xff] %vm182_vm0, %v181_v30  ;;  %230 = vst.msk [vmem:[%s551_s1 + $0x178] sm:$0xff] %vm182_vm0, %v149_v31 }
 0x108   :  { %251 = vsyncpa [#allocation3], 1 }

</bundles_post_ra>
